<compile_context>
chip_gen: v7x
topology: tpu7x:2x2x1
jax: 0.10.0
libtpu: 0.0.40
codegen_flags: <defaults>
</compile_context>

<pallas_src>
import functools

import jax
import jax.numpy as jnp
import numpy as np
from jax import lax
from jax.experimental import pallas as pl
from jax.experimental.pallas import tpu as pltpu

# High-precision matmuls for the host-side fold and the pure-JAX reference.
jax.config.update("jax_default_matmul_precision", "highest")

NEG_INF = -1e30   # finite stand-in for -inf: exp() underflows to exactly 0.0
LANES = 128


def _round_up(a: int, b: int) -> int:
    return (a + b - 1) // b * b


def _cdiv(a: int, b: int) -> int:
    return (a + b - 1) // b


def mlp_attention_kernel(x_ref, w2_ref, len_ref, scores_ref, attn_ref,
                         rowmean_ref, *, nj):
    """Grid = (batch tiles [parallel], seq tiles [arbitrary, last]).

    scores_ref / attn_ref blocks are resident across the seq axis (index_map
    ignores j); raw logits are accumulated lane-dense straight into scores_ref
    and overwritten in place by the masked softmax on the last seq tile.
    """
    TS, TB, H = x_ref.shape
    j = pl.program_id(1)

    # ---- one fused MXU pass over this x block:
    #      column 0 = attention logit, column 1 = mean over hidden ------------
    x2 = x_ref[...].reshape(TS * TB, H)
    y = jnp.dot(x2, w2_ref[...], preferred_element_type=jnp.float32)  # [TS*TB, 2]
    y3 = y.reshape(TS, TB, 2)
    lg_t = y3[:, :, 0].T          # [TB, TS]  batch-major, lane-dense in seq
    rm_t = y3[:, :, 1].T          # [TB, TS]

    if nj == 1:
        # Single seq tile (test path): fully static, sub-lane-width store.
        scores_ref[:, :TS] = lg_t
        rowmean_ref[:, :TS] = rm_t
    else:
        # Multi-tile: TS is a multiple of 128 -> aligned lane-dense stores.
        row0 = pl.multiple_of(j * TS, 128)
        scores_ref[:, pl.ds(row0, TS)] = lg_t
        rowmean_ref[:, pl.ds(row0, TS)] = rm_t

    # ---- last seq tile: masked softmax over full seq + weighted hidden mean -
    @pl.when(j == nj - 1)
    def _finalize():
        lengths = len_ref[...]                            # [TB, 1] int32
        lg = scores_ref[...]                              # [TB, S_pad] raw logits
        col = lax.broadcasted_iota(jnp.int32, lg.shape, 1)
        valid = col < lengths                             # also kills padded cols
        masked = jnp.where(valid, lg, NEG_INF)
        m = jnp.max(masked, axis=-1, keepdims=True)
        e = jnp.exp(masked - m)
        denom = jnp.sum(e, axis=-1, keepdims=True)
        p = e * pl.reciprocal(denom, approx=False)        # approx=True if bit-
                                                          # parity not required
        scores_ref[...] = p                               # overwrite in place
        rm = jnp.where(valid, rowmean_ref[...], 0.0)
        attn = jnp.sum(p * rm, axis=-1, keepdims=True)    # [TB, 1]
        attn_ref[...] = jnp.broadcast_to(attn, attn_ref.shape)


def mlp_attention_forward(x, x_lengths, w_t, bias, v_col,
                          *, block_s=None, block_b=None,
                          vmem_limit_bytes=None):
    """
    x: [S, B, H] (f32, or bf16 to stream at half HBM traffic),
    x_lengths: [B] int, w_t: [H, A] (= proj_w.weight.T), bias: [A],
    v_col: [A] (= proj_v.weight.reshape(A)).
    Returns (scores [B, S] f32, attn_x [B] f32).
    """
    S, B, H = x.shape
    x = jnp.asarray(x)
    if x.dtype != jnp.bfloat16:           # stream bf16 only if it arrives bf16
        x = x.astype(jnp.float32)
    itemsize = jnp.dtype(x.dtype).itemsize
    sub = 8 if itemsize == 4 else 16      # sublane packing (f32 / bf16)

    # ---- host-side algebraic folding (no nonlinearity between the layers) ---
    w_eff = jnp.asarray(w_t, jnp.float32) @ jnp.asarray(v_col, jnp.float32)  # [H]
    del bias  # b_eff = bias.v is uniform along the softmax axis -> cancels
    w2 = jnp.stack([w_eff, jnp.full((H,), 1.0 / H, jnp.float32)], axis=1)    # [H,2]
    w2 = w2.astype(x.dtype)

    # ---- batch tiling: >=2 tiles when possible so both v7x cores get work ---
    if block_b is not None:
        TB = block_b
    elif B >= 2 * sub and B % (2 * sub) == 0:
        TB = B // 2
    else:
        TB = B
    assert B % TB == 0, "batch tile must divide B"
    if TB != B:
        assert TB % sub == 0, "batch tile must be sublane aligned"
    ni = B // TB

    # ---- seq tiling: ~4 MiB x block per grid step (HBM-bandwidth bound) -----
    target_block_bytes = 4 << 20
    if block_s is not None:
        TS = min(block_s, S)
    else:
        rows = max(8, target_block_bytes // max(1, TB * H * itemsize))
        TS = S if S <= rows else max(128, (rows // 128) * 128)
    nj = _cdiv(S, TS)
    if nj == 1:
        TS = S
    else:
        assert TS % 128 == 0, "seq tile must be a multiple of 128 when tiling seq"
    S_pad = _round_up(nj * TS, LANES)     # lane-dense scores width

    lens = jnp.asarray(x_lengths, jnp.int32).reshape(B, 1)

    # ---- VMEM budget derived from the tiling (32..96 MiB) -------------------
    if vmem_limit_bytes is None:
        need = (2 * TS * TB * H * itemsize        # double-buffered x blocks
                + 2 * TB * S_pad * 4              # resident scores block
                + TB * S_pad * 4                  # row-mean scratch
                + 4 * TB * S_pad * 4              # epilogue temporaries / spill
                + 2 * TB * LANES * 4
                + (1 << 20))
        vmem_limit_bytes = int(min(max(need, 32 << 20), 96 << 20))

    kernel = functools.partial(mlp_attention_kernel, nj=nj)

    scores_pad, attn_pad = pl.pallas_call(
        kernel,
        grid=(ni, nj),
        in_specs=[
            # Optionally pipeline_mode=pl.Buffered(3) here if profiling shows
            # exposed DMA at large TS.
            pl.BlockSpec((TS, TB, H), lambda i, j: (j, i, 0)),   # x block
            pl.BlockSpec((H, 2), lambda i, j: (0, 0)),           # folded weights
            pl.BlockSpec((TB, 1), lambda i, j: (i, 0)),          # lengths
        ],
        out_specs=(
            pl.BlockSpec((TB, S_pad), lambda i, j: (i, 0)),      # scores (resident)
            pl.BlockSpec((TB, LANES), lambda i, j: (i, 0)),      # attn (bcast lanes)
        ),
        out_shape=(
            jax.ShapeDtypeStruct((B, S_pad), jnp.float32),
            jax.ShapeDtypeStruct((B, LANES), jnp.float32),
        ),
        scratch_shapes=[
            pltpu.VMEM((TB, S_pad), jnp.float32),   # row-mean slab (lane-dense)
        ],
        compiler_params=pltpu.CompilerParams(
            dimension_semantics=("parallel", "arbitrary"),
            vmem_limit_bytes=vmem_limit_bytes,
        ),
    )(x, w2, lens)

    return scores_pad[:, :S], attn_pad[:, 0]


def reference_forward(x, x_lengths, w_t, bias, v_col):
    """Pure-JAX mirror of the PyTorch module (keeps the bias and the explicit
    two-matmul path, which validates the algebraic folding in the kernel)."""
    S, B, H = x.shape
    flat = x.reshape(S * B, H)
    mlp = flat @ w_t + bias[None, :]
    logits = (mlp @ v_col[:, None]).reshape(S, B).T          # [B, S]
    mask = jnp.arange(S)[None, :] < x_lengths[:, None]
    masked = jnp.where(mask, logits, -jnp.inf)
    p = jax.nn.softmax(masked, axis=-1)                      # [B, S]
    attn = (x * p.T[:, :, None]).sum(0).mean(1)              # [B]
    return p, attn


if __name__ == "__main__":
    S, B, H, A = 8, 4, 32, 16   # seq_len, batch, hidden_dim, attention_dim

    key = jax.random.PRNGKey(0)
    kx, kw, kb, kv = jax.random.split(key, 4)

    x = jax.random.normal(kx, (S, B, H), dtype=jnp.float32)
    w_t = jax.random.normal(kw, (H, A), dtype=jnp.float32) * 0.1   # proj_w.weight.T
    bias = jax.random.normal(kb, (A,), dtype=jnp.float32) * 0.1    # proj_w.bias
    v_col = jax.random.normal(kv, (A,), dtype=jnp.float32) * 0.1   # proj_v.weight
    x_lengths = jnp.array([8, 5, 3, 8], dtype=jnp.int32)           # max == S

    scores, attn = mlp_attention_forward(x, x_lengths, w_t, bias, v_col)
    jax.block_until_ready((scores, attn))

    ref_scores, ref_attn = reference_forward(x, x_lengths, w_t, bias, v_col)
    assert scores.shape == (B, S) and attn.shape == (B,)
    np.testing.assert_allclose(np.asarray(scores), np.asarray(ref_scores),
                               rtol=1e-5, atol=1e-5)
    np.testing.assert_allclose(np.asarray(attn), np.asarray(ref_attn),
                               rtol=1e-5, atol=1e-5)

    print("KERNEL_OK")
</pallas_src>

<mosaic_0001>
module attributes {stable_mosaic.version = 11 : i64} {
  func.func @mlp_attention_kernel(%arg0: i32, %arg1: i32, %arg2: memref<8x4x32xf32, #tpu.memory_space<vmem>>, %arg3: memref<32x2xf32, #tpu.memory_space<vmem>>, %arg4: memref<4x1xi32, #tpu.memory_space<vmem>>, %arg5: memref<4x128xf32, #tpu.memory_space<vmem>>, %arg6: memref<4x128xf32, #tpu.memory_space<vmem>>, %arg7: memref<4x128xf32, #tpu.memory_space<vmem>>) attributes {dimension_semantics = [#tpu.dimension_semantics<parallel>, #tpu.dimension_semantics<arbitrary>], iteration_bounds = array<i64: 1, 1>, scalar_prefetch = 0 : i64, scratch_operands = 1 : i64, tpu.core_type = #tpu.core_type<tc>, window_params = [{transform_indices = @transform_0, window_bounds = array<i64: 8, 4, 32>}, {pipeline_mode = #tpu.pipeline_mode<synchronous>, transform_indices = @transform_1, window_bounds = array<i64: 32, 2>}, {transform_indices = @transform_2, window_bounds = array<i64: 4, 1>}, {transform_indices = @transform_3, window_bounds = array<i64: 4, 128>}, {transform_indices = @transform_4, window_bounds = array<i64: 4, 128>}]} {
    %c0 = arith.constant 0 : index
    %c0_0 = arith.constant 0 : index
    %c0_1 = arith.constant 0 : index
    %0 = vector.load %arg2[%c0, %c0_0, %c0_1] : memref<8x4x32xf32, #tpu.memory_space<vmem>>, vector<8x4x32xf32>
    %1 = vector.shape_cast %0 : vector<8x4x32xf32> to vector<32x32xf32>
    %c0_2 = arith.constant 0 : index
    %c0_3 = arith.constant 0 : index
    %2 = vector.load %arg3[%c0_2, %c0_3] : memref<32x2xf32, #tpu.memory_space<vmem>>, vector<32x2xf32>
    %cst = arith.constant dense<0.000000e+00> : vector<32x2xf32>
    %3 = tpu.matmul %1, %2, %cst {dimension_numbers = #tpu.dot_dimension_numbers<[1], [0], [0], [1], [0, 0, 1, 1], [], []>, precision = #tpu.contract_precision<fp32>} : vector<32x32xf32>, vector<32x2xf32>, vector<32x2xf32> -> vector<32x2xf32>
    %4 = vector.shape_cast %3 : vector<32x2xf32> to vector<8x4x2xf32>
    %5 = vector.extract_strided_slice %4 {offsets = [0, 0, 0], sizes = [8, 4, 1], strides = [1, 1, 1]} : vector<8x4x2xf32> to vector<8x4x1xf32>
    %6 = vector.shape_cast %5 : vector<8x4x1xf32> to vector<8x4xf32>
    %7 = tpu.transpose %6, [1, 0] : vector<8x4xf32> -> vector<4x8xf32>
    %8 = vector.extract_strided_slice %4 {offsets = [0, 0, 1], sizes = [8, 4, 1], strides = [1, 1, 1]} : vector<8x4x2xf32> to vector<8x4x1xf32>
    %9 = vector.shape_cast %8 : vector<8x4x1xf32> to vector<8x4xf32>
    %10 = tpu.transpose %9, [1, 0] : vector<8x4xf32> -> vector<4x8xf32>
    %c0_4 = arith.constant 0 : index
    %c0_5 = arith.constant 0 : index
    %11 = vector.load %arg5[%c0_4, %c0_5] : memref<4x128xf32, #tpu.memory_space<vmem>>, vector<4x8xf32>
    tpu.vector_store %arg5[%c0_4, %c0_5], %7 {strides = array<i32>} : memref<4x128xf32, #tpu.memory_space<vmem>>, vector<4x8xf32>,
    %c0_6 = arith.constant 0 : index
    %c0_7 = arith.constant 0 : index
    %12 = vector.load %arg7[%c0_6, %c0_7] : memref<4x128xf32, #tpu.memory_space<vmem>>, vector<4x8xf32>
    tpu.vector_store %arg7[%c0_6, %c0_7], %10 {strides = array<i32>} : memref<4x128xf32, #tpu.memory_space<vmem>>, vector<4x8xf32>,
    %c0_i32 = arith.constant 0 : i32
    %13 = arith.cmpi eq, %arg1, %c0_i32 : i32
    %14 = arith.extui %13 : i1 to i32
    %c0_i32_8 = arith.constant 0 : i32
    %15 = arith.cmpi ne, %14, %c0_i32_8 : i32
    scf.if %15 {
      %c0_9 = arith.constant 0 : index
      %c0_10 = arith.constant 0 : index
      %16 = vector.load %arg4[%c0_9, %c0_10] : memref<4x1xi32, #tpu.memory_space<vmem>>, vector<4x1xi32>
      %c0_11 = arith.constant 0 : index
      %c0_12 = arith.constant 0 : index
      %17 = vector.load %arg5[%c0_11, %c0_12] : memref<4x128xf32, #tpu.memory_space<vmem>>, vector<4x128xf32>
      %18 = tpu.iota {dimensions = array<i32: 1>} : vector<4x128xi32>
      %19 = vector.broadcast %16 : vector<4x1xi32> to vector<4x128xi32>
      %20 = arith.cmpi slt, %18, %19 : vector<4x128xi32>
      %cst_13 = arith.constant -1.000000e+30 : f32
      %21 = vector.broadcast %cst_13 : f32 to vector<4x128xf32>
      %22 = arith.select %20, %17, %21 : vector<4x128xi1>, vector<4x128xf32>
      %cst_14 = arith.constant dense<0xFF800000> : vector<4xf32>
      %23 = vector.multi_reduction <maximumf>, %22, %cst_14 [1] : vector<4x128xf32> to vector<4xf32>
      %24 = vector.shape_cast %23 : vector<4xf32> to vector<4x1xf32>
      %25 = vector.broadcast %24 : vector<4x1xf32> to vector<4x128xf32>
      %26 = arith.subf %22, %25 : vector<4x128xf32>
      %27 = math.exp %26 : vector<4x128xf32>
      %cst_15 = arith.constant dense<0.000000e+00> : vector<4xf32>
      %28 = vector.multi_reduction <add>, %27, %cst_15 [1] : vector<4x128xf32> to vector<4xf32>
      %29 = vector.shape_cast %28 : vector<4xf32> to vector<4x1xf32>
      %30 = tpu.reciprocal %29 : vector<4x1xf32> -> vector<4x1xf32>
      %31 = vector.broadcast %30 : vector<4x1xf32> to vector<4x128xf32>
      %32 = arith.mulf %27, %31 : vector<4x128xf32>
      %c0_16 = arith.constant 0 : index
      %c0_17 = arith.constant 0 : index
      %33 = vector.load %arg5[%c0_16, %c0_17] : memref<4x128xf32, #tpu.memory_space<vmem>>, vector<4x128xf32>
      tpu.vector_store %arg5[%c0_16, %c0_17], %32 {strides = array<i32>} : memref<4x128xf32, #tpu.memory_space<vmem>>, vector<4x128xf32>,
      %c0_18 = arith.constant 0 : index
      %c0_19 = arith.constant 0 : index
      %34 = vector.load %arg7[%c0_18, %c0_19] : memref<4x128xf32, #tpu.memory_space<vmem>>, vector<4x128xf32>
      %cst_20 = arith.constant 0.000000e+00 : f32
      %35 = vector.broadcast %cst_20 : f32 to vector<4x128xf32>
      %36 = arith.select %20, %34, %35 : vector<4x128xi1>, vector<4x128xf32>
      %37 = arith.mulf %32, %36 : vector<4x128xf32>
      %cst_21 = arith.constant dense<0.000000e+00> : vector<4xf32>
      %38 = vector.multi_reduction <add>, %37, %cst_21 [1] : vector<4x128xf32> to vector<4xf32>
      %39 = vector.shape_cast %38 : vector<4xf32> to vector<4x1xf32>
      %40 = vector.shape_cast %39 : vector<4x1xf32> to vector<4x1xf32>
      %41 = vector.broadcast %40 : vector<4x1xf32> to vector<4x128xf32>
      %c0_22 = arith.constant 0 : index
      %c0_23 = arith.constant 0 : index
      %42 = vector.load %arg6[%c0_22, %c0_23] : memref<4x128xf32, #tpu.memory_space<vmem>>, vector<4x128xf32>
      tpu.vector_store %arg6[%c0_22, %c0_23], %41 {strides = array<i32>} : memref<4x128xf32, #tpu.memory_space<vmem>>, vector<4x128xf32>,
    } else {
    }
    return
  }
  func.func @transform_0(%arg0: i32, %arg1: i32) -> (i32, i32, i32) {
    %c0_i32 = arith.constant 0 : i32
    %c0_i32_0 = arith.constant 0 : i32
    return %arg1, %arg0, %c0_i32 : i32, i32, i32
  }
  func.func @transform_1(%arg0: i32, %arg1: i32) -> (i32, i32) {
    %c0_i32 = arith.constant 0 : i32
    %c0_i32_0 = arith.constant 0 : i32
    %c0_i32_1 = arith.constant 0 : i32
    return %c0_i32, %c0_i32_0 : i32, i32
  }
  func.func @transform_2(%arg0: i32, %arg1: i32) -> (i32, i32) {
    %c0_i32 = arith.constant 0 : i32
    %c0_i32_0 = arith.constant 0 : i32
    return %arg0, %c0_i32 : i32, i32
  }
  func.func @transform_3(%arg0: i32, %arg1: i32) -> (i32, i32) {
    %c0_i32 = arith.constant 0 : i32
    %c0_i32_0 = arith.constant 0 : i32
    return %arg0, %c0_i32 : i32, i32
  }
  func.func @transform_4(%arg0: i32, %arg1: i32) -> (i32, i32) {
    %c0_i32 = arith.constant 0 : i32
    %c0_i32_0 = arith.constant 0 : i32
    return %arg0, %c0_i32 : i32, i32
  }
}

</mosaic_0001>

<bundles_post_ra>
// kernel: tpu_custom_call.1
= control target key start
LH: loop header
LB: loop body
LE: loop exit
PB: predicated region body
PF: predicated region fallthrough
CT: control target
= control target key end

     0   :  { %10 = vsyncpa [#allocation4], 0  ;;  %vm42_vm0 = vcmask 261120   ;;  %s1416_s0 = inlined_call_operand.vmem [shape: f32[8,4,32], index: 0, kind: input, shape index: {}]   ;;  %s1417_s1 = inlined_call_operand.vmem [shape: f32[32,2], index: 1, kind: input, shape index: {}]   ;;  %s1418_s2 = inlined_call_operand.vmem [shape: s32[4,1], index: 2, kind: input, shape index: {}]   ;;  %s1419_s3 = inlined_call_operand.hbm [shape: f32[4,128], index: 3, kind: output, shape index: {0}]   ;;  %s1420_s4 = inlined_call_operand.hbm [shape: f32[4,128], index: 4, kind: output, shape index: {1}]  }
   0x1   :  { %v26_v0 = vld [vmem:[%s1417_s1] sm:$0xff]  ;;  %v27_v1 = vld [vmem:[%s1417_s1 + $0x8] sm:$0xff]  ;;  %v28_v2 = vld [vmem:[%s1417_s1 + $0x10] sm:$0xff] }
   0x2   :  { %v52_v3 = vand.u32 4294901760, %v26_v0  ;;  %v55_v4 = vand.u32 4294901760, %v27_v1  ;;  %v29_v5 = vld [vmem:[%s1417_s1 + $0x18] sm:$0xff]  ;;  %v58_v6 = vand.u32 4294901760, %v28_v2  ;;  %v1146_v8 = vld [vmem:[%s1416_s0] sm:$0xff]   ;;  %v1147_v10 = vld [vmem:[%s1416_s0 + $0x8] sm:$0xff]  }
   0x3   :  { %v61_v7 = vand.u32 4294901760, %v29_v5  ;;  %v43_v15 = vsel %vm42_vm0, %v1146_v8, 0  ;;  %v1148_v16 = vld [vmem:[%s1416_s0 + $0x10] sm:$0xff]   ;;  %v45_v19 = vsel %vm42_vm0, %v1147_v10, 0  ;;  %v1149_v24 = vld [vmem:[%s1416_s0 + $0x18] sm:$0xff]  }
   0x4   :  { %v1246_v9 = vpack.c.bf16 %v55_v4, %v52_v3  ;;  %v1251_v11 = vsub.f32 %v26_v0, %v52_v3  ;;  %v1253_v12 = vsub.f32 %v27_v1, %v55_v4  ;;  %v1255_v13 = vsub.f32 %v28_v2, %v58_v6 }
   0x5   :  { %v1257_v14 = vpack.c.bf16 %v61_v7, %v58_v6  ;;  %v1263_v17 = vsub.f32 %v29_v5, %v61_v7  ;;  %v1267_v18 = vand.u32 4294901760, %v43_v15  ;;  %v1274_v22 = vand.u32 4294901760, %v45_v19 }
   0x6   :  { %1093 = vmatprep.subr.bf16.mxu0 %v1246_v9  ;;  %1069 = vmatprep.subr.bf16.mxu1 %v1246_v9  ;;  %v163_v20 = vand.u32 4294901760, %v1251_v11  ;;  %v170_v21 = vand.u32 4294901760, %v1253_v12  ;;  %v47_v23 = vsel %vm42_vm0, %v1148_v16, 0  ;;  %v177_v25 = vand.u32 4294901760, %v1255_v13 }
   0x7   :  { %1095 = vmatpush3.bf16.msra.mxu0 %v1246_v9  ;;  %1071 = vmatpush3.bf16.msra.mxu1 %v1246_v9  ;;  %v184_v26 = vand.u32 4294901760, %v1263_v17  ;;  %v1285_v27 = vsub.f32 %v43_v15, %v1267_v18  ;;  %v1288_v30 = vand.u32 4294901760, %v47_v23 }
   0x8   :  { %1097 = vmatprep.subr.bf16.mxu0 %v1257_v14  ;;  %1073 = vmatprep.subr.bf16.mxu1 %v1257_v14  ;;  %v1100_v28 = vpack.c.bf16 %v170_v21, %v163_v20  ;;  %v164_v29 = vsub.f32 %v1251_v11, %v163_v20 }
   0x9   :  { %11 = vsyncpa [#allocation6], 0  ;;  %v1291_v31 = vsub.f32 %v45_v19, %v1274_v22  ;;  %v171_v32 = vsub.f32 %v1253_v12, %v170_v21  ;;  %v49_v33 = vsel %vm42_vm0, %v1149_v24, 0  ;;  %v122_v34 = vand.u32 4294901760, %v1285_v27 }
   0xa   :  { %v165_v35 = vand.u32 4294901760, %v164_v29  ;;  %v141_v36 = vsub.f32 %v47_v23, %v1288_v30  ;;  %v150_v37 = vand.u32 4294901760, %v49_v33  ;;  %v178_v40 = vsub.f32 %v1255_v13, %v177_v25 }
   0xb   :  { %1099 = vmatpush3.bf16.msra.mxu0 %v1257_v14  ;;  %1075 = vmatpush3.bf16.msra.mxu1 %v1257_v14  ;;  %v132_v38 = vand.u32 4294901760, %v1291_v31  ;;  %v172_v39 = vand.u32 4294901760, %v171_v32  ;;  %v185_v41 = vsub.f32 %v1263_v17, %v184_v26  ;;  %v123_v42 = vsub.f32 %v1285_v27, %v122_v34 }
   0xc   :  { %1034 = vmatprep.mubr.f32.mxu0 %v122_v34  ;;  %1101 = vmatprep.subr.bf16.mxu0 %v1100_v28  ;;  %v142_v43 = vand.u32 4294901760, %v141_v36  ;;  %v151_v44 = vsub.f32 %v49_v33, %v150_v37  ;;  %v1104_v45 = vpack.c.bf16 %v184_v26, %v177_v25  ;;  %v179_v48 = vand.u32 4294901760, %v178_v40 }
   0xd   :  { %v1076_v46 = vpack.c.bf16 %v172_v39, %v165_v35  ;;  %v133_v47 = vsub.f32 %v1291_v31, %v132_v38  ;;  %v186_v49 = vand.u32 4294901760, %v185_v41  ;;  %v124_v50 = vand.u32 4294901760, %v123_v42 }
   0xe   :  { %1035 = vmatmul.mubr.f32.vlgmr.msra.gmra.mrb[0].mxu0 %v132_v38  ;;  %v152_v51 = vand.u32 4294901760, %v151_v44  ;;  %v143_v52 = vsub.f32 %v141_v36, %v142_v43  ;;  %v1084_v58 = vpack.c.bf16 %v1253_v12, %v1251_v11  ;;  %v1088_v59 = vpack.c.bf16 %v1263_v17, %v1255_v13  ;;  %v881_v13 = vld [vmem:[%s1418_s2] sm:$0xf]  ;;  %s1204_s2 = smov [#allocation3]  }
   0xf   :  { %1077 = vmatprep.subr.bf16.mxu1 %v1076_v46  ;;  %1103 = vmatpush3.bf16.msra.mxu0 %v1100_v28  ;;  %v134_v53 = vand.u32 4294901760, %v133_v47  ;;  %v1080_v54 = vpack.c.bf16 %v186_v49, %v179_v48  ;;  %v1202_v60 = vmov 0   ;;  %v697_v15 = vlaneseq  ;;  %s914_s5 = sshll.u32 %s1204_s2, 4  ;;  %s915_s5 = int_to_ptr.vmem [resolvable:$true] %s914_s5 }
  0x10   :  { %992 = vmatprep.mubr.f32.mxu1 %v124_v50  ;;  %1037 = vmatprep.mubr.f32.mxu0 %v142_v43  ;;  %v144_v55 = vand.u32 4294901760, %v143_v52  ;;  %v153_v56 = vsub.f32 %v151_v44, %v152_v51  ;;  %vm731_vm1 = vcmask 1041409   ;;  %vm733_vm2 = vcmask 1042434   ;;  %s1154_s6 = scalar_lea.vmem %s915_s5, 64  ;;  %p1159_p1 = scmp.lt.s32.totalorder %s915_s5, %s915_s5 }
  0x11   :  { %993 = vmatmul.mubr.f32.vlgmr.msra.gmra.mrb[0].mxu1 %v134_v53  ;;  %1105 = vmatprep.subr.bf16.mxu0 %v1104_v45  ;;  %v1343_v16 = vand.u32 127, %v697_v15  ;;  %v700_v17 = vshrl.u32 %v697_v15, 7  ;;  %vm735_vm3 = vcmask 1043459   ;;  %vm737_vm4 = vcmask 1044484   ;;  %p1155_p0 = scmp.ne.s32.totalorder %s915_s5, %s1154_s6  ;;  %p1160_p2 = scmp.lt.s32.totalorder %s1154_s6, %s1154_s6 }
  0x12   :  { %1079 = vmatpush3.bf16.msra.mxu1 %v1076_v46  ;;  %1038 = vmatmul.mubr.f32.gmra.mrb[2].mxu0 %v152_v51  ;;  %v154_v57 = vand.u32 4294901760, %v153_v56  ;;  %vm739_vm5 = vcmask 1045509   ;;  %vm741_vm6 = vcmask 1046534   ;;  %vm743_vm7 = vcmask 1047559  }
  0x13   :  { %995 = vmatprep.mubr.f32.mxu1 %v144_v55  ;;  %1081 = vmatprep.subr.bf16.mxu1 %v1080_v54  ;;  %v1346_v20 = vsub.s32 %v1343_v16, %v700_v17  ;;  %vm874_vm8 = vcmask 60416   ;;  %vm888_vm9 = vcmask 1043456   ;;  %p1161_p3 = por %p1160_p2, %p1159_p1 }
  0x14   :  { %1107 = vmatpush3.bf16.msra.mxu0 %v1104_v45  ;;  %1048 = vmatprep.mubr.f32.mxu0 %v1267_v18 }
  0x15   :  { %996 = vmatmul.mubr.f32.gmra.mrb[2].mxu1 %v154_v57  ;;  %1109 = vmatprep.subr.bf16.mxu0 %v1246_v9  ;;  %p1162_p4 = pnand %p1161_p3, %p1155_p0 }
  0x16   :  { %1083 = vmatpush3.bf16.msra.mxu1 %v1080_v54  ;;  %1006 = vmatprep.mubr.f32.mxu1 %v1267_v18 }
  0x17   :  { %1049 = vmatmul.mubr.f32.vlgmr.msra.gmra.mrb[0].mxu0 %v1274_v22  ;;  %1085 = vmatprep.subr.bf16.mxu1 %v1084_v58 }
  0x18   :  { %1111 = vmatpush3.bf16.msra.mxu0 %v1246_v9  ;;  %1051 = vmatprep.mubr.f32.mxu0 %v1288_v30 }
  0x19   :  { %1007 = vmatmul.mubr.f32.vlgmr.msra.gmra.mrb[0].mxu1 %v1274_v22  ;;  %1113 = vmatprep.subr.bf16.mxu0 %v1257_v14 }
  0x1a   :  { %1087 = vmatpush3.bf16.msra.mxu1 %v1084_v58  ;;  %1009 = vmatprep.mubr.f32.mxu1 %v1288_v30 }
  0x1b   :  { %1052 = vmatmul.mubr.f32.gmra.mrb[2].mxu0 %v150_v37  ;;  %1089 = vmatprep.subr.bf16.mxu1 %v1088_v59 }
  0x1c   :  { %1115 = vmatpush3.bf16.msra.mxu0 %v1257_v14  ;;  %1062 = vmatprep.mubr.f32.mxu0 %v1267_v18  ;;  %v1203_v14 = vmov 1  }
  0x1d   :  { %1010 = vmatmul.mubr.f32.gmra.mrb[2].mxu1 %v150_v37  ;;  %1141 = vset.pattern.permute.xlu1 %v1202_v60 }
  0x1e   :  { %1091 = vmatpush3.bf16.msra.mxu1 %v1088_v59  ;;  %1020 = vmatprep.mubr.f32.mxu1 %v1285_v27 }
  0x1f   :  { %1063 = vmatmul.mubr.f32.vlgmr.msra.gmra.mrb[0].mxu0 %v1274_v22  ;;  %1142 = vset.pattern.permute.xlu0 %v1202_v60 }
  0x20   :  { %1065 = vmatprep.mubr.f32.mxu0 %v1288_v30 }
  0x21   :  { %1021 = vmatmul.mubr.f32.vlgmr.msra.gmra.mrb[0].mxu1 %v1291_v31 }
  0x22   :  { %1023 = vmatprep.mubr.f32.mxu1 %v141_v36 }
  0x23   :  { %1066 = vmatmul.mubr.f32.gmra.mrb[2].mxu0 %v150_v37 }
  0x25   :  { %1024 = vmatmul.mubr.f32.gmra.mrb[2].mxu1 %v151_v44 }
  0xf2   :  { %v1064_v61 = vpop.f32.mrb[0].mxu0 }
  0xf3   :  { %v643_v62 = vpop.f32.mrb[1].mxu0 }
  0xf4   :  { %v1022_v63 = vpop.f32.mrb[0].mxu1 }
  0xf5   :  { %v1116_v0 = vadd.f32 %v1064_v61, %v1022_v63  ;;  %v345_v1 = vpop.f32.mrb[1].mxu1 }
  0xf6   :  { %v1325_v2 = vadd.f32 %v643_v62, %v345_v1  ;;  %v1067_v3 = vpop.f32.mrb[2].mxu0 }
  0xf7   :  { %v655_v4 = vpop.f32.mrb[3].mxu0  ;;  %680 = vperm.xlu1 %1141, %v1116_v0   ;;  %v670_v8 = vcombine.high %v1116_v0, %v1116_v0 }
  0xf8   :  { %674 = vperm.xlu0 %1142, %v1325_v2   ;;  %v1025_v5 = vpop.f32.mrb[2].mxu1  ;;  %v669_v10 = vcombine.high %v1325_v2, %v1325_v2 }
  0xf9   :  { %v1328_v6 = vadd.f32 %v1067_v3, %v1025_v5  ;;  %v359_v7 = vpop.f32.mrb[3].mxu1 }
  0xfa   :  { %v1330_v9 = vadd.f32 %v655_v4, %v359_v7 }
  0xfb   :  { %683 = vperm.xlu1 %1141, %v670_v8   ;;  %v672_v12 = vcombine.high %v1328_v6, %v1328_v6 }
  0xfc   :  { %677 = vperm.xlu0 %1142, %v669_v10   ;;  %v671_v11 = vcombine.high %v1330_v9, %v1330_v9 }
  0xff   :  { %689 = vperm.xlu1 %1141, %v671_v11  }
 0x100   :  { %686 = vperm.xlu0 %1142, %v1330_v9  }
 0x103   :  { %695 = vperm.xlu1 %1141, %v672_v12  }
 0x104   :  { %692 = vperm.xlu0 %1142, %v1328_v6  }
 0x108   :  { %884 = vperm.xlu0 %1142, %v881_v13  }
 0x10c   :  { %1143 = vset.pattern.permute.xlu0 %v1203_v14 }
 0x176   :  { %v681_v18 = vpop.permute.xlu1 %680 }
 0x177   :  { %v675_v19 = vpop.permute.xlu0 %674  ;;  %v710_v25 = vrot.slane %v681_v18, %v1346_v20 }
 0x178   :  { %v702_v23 = vrot.slane %v675_v19, %v1346_v20 }
 0x17a   :  { %v684_v21 = vpop.permute.xlu1 %683 }
 0x17b   :  { %v678_v22 = vpop.permute.xlu0 %677  ;;  %v714_v26 = vrot.slane %v684_v21, %v1346_v20 }
 0x17c   :  { %v706_v24 = vrot.slane %v678_v22, %v1346_v20 }
 0x17e   :  { %v732_v27 = vsel %vm731_vm1, %v706_v24, %v702_v23  ;;  %v690_v28 = vpop.permute.xlu1 %689 }
 0x17f   :  { %v734_v29 = vsel %vm733_vm2, %v710_v25, %v732_v27  ;;  %v687_v30 = vpop.permute.xlu0 %686  ;;  %v722_v35 = vrot.slane %v690_v28, %v1346_v20 }
 0x180   :  { %v736_v31 = vsel %vm735_vm3, %v714_v26, %v734_v29  ;;  %v718_v32 = vrot.slane %v687_v30, %v1346_v20 }
 0x182   :  { %v738_v33 = vsel %vm737_vm4, %v718_v32, %v736_v31  ;;  %v696_v34 = vpop.permute.xlu1 %695 }
 0x183   :  { %v693_v36 = vpop.permute.xlu0 %692  ;;  %v730_v38 = vrot.slane %v696_v34, %v1346_v20  ;;  %v740_v39 = vsel %vm739_vm5, %v722_v35, %v738_v33 }
 0x184   :  { %v726_v37 = vrot.slane %v693_v36, %v1346_v20 }
 0x186   :  { %v742_v40 = vsel %vm741_vm6, %v726_v37, %v740_v39 }
 0x187   :  { %v744_v41 = vsel %vm743_vm7, %v730_v38, %v742_v40  ;;  %v885_v43 = vpop.permute.xlu0 %884 }
 0x188   :  { %746 = vxpose.xlu1.b32.start.end [1/1] (short) (narrow) %v744_v41, 8  ;;  %vm886_vm10 = vcmp.lt.s32.totalorder %v1343_v16, %v885_v43 }
 0x1a6   :  { %1144 = vset.pattern.permute.xlu1 %v1203_v14 }
 0x1a7   :  { %782 = vperm.xlu1 %1144, %v669_v10  }
 0x1ab   :  { %785 = vperm.xlu1 %1144, %v1116_v0  }
 0x1af   :  { %788 = vperm.xlu1 %1144, %v670_v8  }
 0x1b3   :  { %794 = vperm.xlu1 %1144, %v671_v11  }
 0x1b7   :  { %800 = vperm.xlu1 %1144, %v672_v12  }
 0x208   :  { %v762_v42 = vpop.trf.xlu1 }
 0x209   :  { %875 = vst.msk [vmem:[#allocation3] sm:$0xf] %vm874_vm8, %v762_v42 }
 0x210   :  { %v882_v44 = vld [vmem:[#allocation3] sm:$0xf] }
 0x211   :  { %v887_v45 = vsel %vm886_vm10, %v882_v44, -1e+30 }
 0x212   :  { %v889_v46 = vsel %vm888_vm9, %v887_v45, -inf }
 0x213   :  { %890 = vmax.xlane.f32.xlu0 %v889_v46 }
 0x226   :  { %v783_v47 = vpop.permute.xlu1 %782 }
 0x227   :  { %v809_v54 = vrot.slane %v783_v47, %v1346_v20 }
 0x229   :  { %779 = vperm.xlu0 %1143, %v1325_v2  }
 0x22a   :  { %v786_v48 = vpop.permute.xlu1 %785 }
 0x22b   :  { %v813_v57 = vrot.slane %v786_v48, %v1346_v20 }
 0x22d   :  { %791 = vperm.xlu0 %1143, %v1330_v9  }
 0x22e   :  { %v789_v51 = vpop.permute.xlu1 %788 }
 0x22f   :  { %v817_v58 = vrot.slane %v789_v51, %v1346_v20 }
 0x231   :  { %797 = vperm.xlu0 %1143, %v1328_v6  }
 0x232   :  { %v795_v55 = vpop.permute.xlu1 %794 }
 0x233   :  { %v825_v3 = vrot.slane %v795_v55, %v1346_v20 }
 0x235   :  { %1145 = vset.pattern.permute.xlu0 %v1202_v60 }
 0x236   :  { %v801_v1 = vpop.permute.xlu1 %800 }
 0x237   :  { %v833_v7 = vrot.slane %v801_v1, %v1346_v20 }
 0x2a0   :  { %v891_v49 = vpop.xlane.xlu0 %890 }
 0x2a1   :  { %v892_v50 = vsub.f32 %v887_v45, %v891_v49 }
 0x2a3   :  { %v893_v52 = vmul.f32 1.442695, %v892_v50 }
 0x2a5   :  { %1150 = vpow2.f32 %v893_v52 }
 0x2a8   :  { %v780_v53 = vpop.permute.xlu0 %779 }
 0x2a9   :  { %v805_v56 = vrot.slane %v780_v53, %v1346_v20 }
 0x2ab   :  { %v834_v59 = vsel %vm731_vm1, %v809_v54, %v805_v56 }
 0x2ac   :  { %v835_v60 = vsel %vm733_vm2, %v813_v57, %v834_v59  ;;  %v792_v61 = vpop.permute.xlu0 %791 }
 0x2ad   :  { %v821_v62 = vrot.slane %v792_v61, %v1346_v20  ;;  %v836_v63 = vsel %vm735_vm3, %v817_v58, %v835_v60 }
 0x2af   :  { %v1151_v0 = vpop.eup %1150  ;;  %v837_v2 = vsel %vm737_vm4, %v821_v62, %v836_v63 }
 0x2b0   :  { %v798_v4 = vpop.permute.xlu0 %797  ;;  %v895_v5 = vsel %vm888_vm9, %v1151_v0, 0.0  ;;  %v838_v8 = vsel %vm739_vm5, %v825_v3, %v837_v2 }
 0x2b1   :  { %v829_v6 = vrot.slane %v798_v4, %v1346_v20  ;;  %896 = vadd.xlane.f32.xlu0 %v895_v5 }
 0x2b3   :  { %v839_v9 = vsel %vm741_vm6, %v829_v6, %v838_v8 }
 0x2b4   :  { %v840_v10 = vsel %vm743_vm7, %v833_v7, %v839_v9 }
 0x2b5   :  { %842 = vxpose.xlu1.b32.start.end [1/1] (short) (narrow) %v840_v10, 8 }
 0x335   :  { %v858_v11 = vpop.trf.xlu1 }
 0x336   :  { %876 = vst.msk [vmem:[#allocation2] sm:$0xf] %vm874_vm8, %v858_v11 }
 0x33d   :  { %v901_v13 = vld [vmem:[#allocation2] sm:$0xf] }
 0x33e   :  { %v897_v12 = vpop.xlane.xlu0 %896  ;;  %v902_v17 = vsel %vm886_vm10, %v901_v13, 0.0 }
 0x33f   :  { %1152 = vrcp.f32 %v897_v12 }
 0x349   :  { %v1153_v14 = vpop.eup %1152 }
 0x34a   :  { %v899_v15 = vmul.f32 %v1153_v14, %v1151_v0 }
 0x34c   :  { %v903_v18 = vmul.f32 %v902_v17, %v899_v15  ;;  %900 = vst [vmem:[#allocation3] sm:$0xf] %v899_v15 }
 0x34e   :  { %v904_v19 = vsel %vm888_vm9, %v903_v18, 0.0 }
 0x34f   :  { %905 = vadd.xlane.f32.xlu0 %v904_v19 }
 0x350   :  { %1165 = shalt.err (!%p1162_p4)
}
 0x351   :  { %s1166_s9 = scalar_lea.hbm %s1419_s3, 64 }
 0x352   :  { %p1167_p5 = scmp.ne.s32.totalorder %s1419_s3, %s1166_s9  ;;  %p1170_p6 = scmp.lt.u32.totalorder %s1166_s9, %s1419_s3 }
 0x354   :  { %p1172_p7 = pnand %p1170_p6, %p1167_p5 }
 0x356   :  { %1175 = shalt.err (!%p1172_p7)
}
 0x357   :  { %917 = dma.vmem_to_hbm [thread:$0]  %s915_s5, 64, %s1419_s3, [#allocation4]  }
 0x358   :  { %s1205_s16 = smov [#allocation5]  }
 0x359   :  { %s924_s17 = sshll.u32 %s1205_s16, 4  ;;  %s925_s17 = int_to_ptr.vmem [resolvable:$true] %s924_s17 }
 0x35a   :  { %s1176_s18 = scalar_lea.vmem %s925_s17, 64  ;;  %p1181_p9 = scmp.lt.s32.totalorder %s925_s17, %s925_s17 }
 0x35b   :  { %p1177_p8 = scmp.ne.s32.totalorder %s925_s17, %s1176_s18  ;;  %p1182_p10 = scmp.lt.s32.totalorder %s1176_s18, %s1176_s18 }
 0x35d   :  { %p1183_p11 = por %p1182_p10, %p1181_p9 }
 0x35f   :  { %p1184_p12 = pnand %p1183_p11, %p1177_p8 }
 0x3dc   :  { %v906_v16 = vpop.xlane.xlu0 %905 }
 0x3dd   :  { %907 = vst [vmem:[#allocation5] sm:$0xf] %v906_v16 }
 0x3de   :  { %1187 = shalt.err (!%p1184_p12)
}
 0x3df   :  { %s1188_s21 = scalar_lea.hbm %s1420_s4, 64 }
 0x3e0   :  { %p1189_p13 = scmp.ne.s32.totalorder %s1420_s4, %s1188_s21  ;;  %p1192_p0 = scmp.lt.u32.totalorder %s1188_s21, %s1420_s4 }
 0x3e2   :  { %p1194_p1 = pnand %p1192_p0, %p1189_p13 }
 0x3e4   :  { %1197 = shalt.err (!%p1194_p1)
}
 0x3e5   :  { %927 = dma.vmem_to_hbm [thread:$0]  %s925_s17, 64, %s1420_s4, [#allocation6]  }
 0x3e6   :  { %1198 = dma.done.wait [#allocation4], 64  }
 0x3e7   :  { %1199 = vsyncadd [#allocation4], 4294967232 }
 0x3e8   :  { %1200 = dma.done.wait [#allocation6], 64  }
 0x3e9   :  { %1201 = vsyncadd [#allocation6], 4294967232 }
 0x3ea   :  { %934 = vsyncpa [#allocation4], 1 }
 0x3eb   :  { %935 = vsyncpa [#allocation6], 1 }

</bundles_post_ra>
